<compile_context>
chip_gen: v7x
topology: tpu7x:2x2x1
jax: 0.10.0
libtpu: 0.0.40
codegen_flags: <defaults>
</compile_context>

<pallas_src>
import functools
import math

import jax
import jax.numpy as jnp
from jax.experimental import pallas as pl
from jax.experimental.pallas import tpu as pltpu


def _make_kernel(levels: int, out_dim: int, transpose_out: bool):
    # Per-level frequencies: Python float 2^i * pi, rounded to f32 at use,
    # matching the reference arithmetic.
    scales = [float(2.0 ** i) * math.pi for i in range(levels)]
    out_pad = -(-out_dim // 8) * 8          # pad feature rows to a sublane multiple

    def kernel(x_ref, o_ref):
        x = x_ref[...]                       # (3, tile) f32, points on the LANE axis
        pieces = [x]
        if levels:
            # One packed slab -> exactly ONE dense jnp.sin and ONE jnp.cos per
            # block (full lane + good sublane occupancy on the EUP/VPU) instead
            # of 2*levels narrow transcendental passes.
            med = jnp.concatenate([s * x for s in scales], axis=0)   # (3L, tile)
            sin_all = jnp.sin(med)
            cos_all = jnp.cos(med)
            # TODO(synk): on v7x (VALU-bound) levels >= 1 could be generated from
            # level-0 sin/cos via double-angle recurrences; kept exact here so the
            # 1e-5 tolerance holds for arbitrary `levels`.
            for i in range(levels):
                pieces.append(sin_all[3 * i:3 * i + 3, :])
                pieces.append(cos_all[3 * i:3 * i + 3, :])
        if out_pad != out_dim:
            pieces.append(jnp.zeros((out_pad - out_dim, x.shape[1]), jnp.float32))

        # Single (out_pad, tile) block in the final interleaved [x, sin_i, cos_i]
        # row order -> one store, no per-level sublane-sliced stores.
        blk = jnp.concatenate(pieces, axis=0)

        if transpose_out:
            # In-kernel XLU transpose: store point-major (tile, out_dim) blocks
            # directly, eliminating the wrapper-side [C,N]->[N,C] HBM round trip.
            o_ref[...] = jnp.transpose(blk)[:, :out_dim]
        else:
            # Fallback: feature-major, one dense lane-wide store.
            o_ref[...] = blk[:out_dim, :]

    return kernel


def _encode(xt, n_pad, tile, grid, levels, out_dim, transpose_out):
    kernel = _make_kernel(levels, out_dim, transpose_out)
    if transpose_out:
        out_shape = jax.ShapeDtypeStruct((n_pad, out_dim), jnp.float32)
        out_spec = pl.BlockSpec((tile, out_dim), lambda i: (i, 0))
    else:
        out_shape = jax.ShapeDtypeStruct((out_dim, n_pad), jnp.float32)
        out_spec = pl.BlockSpec((out_dim, tile), lambda i: (0, i))

    cost = pl.CostEstimate(
        flops=9 * levels * n_pad,                      # per-level frequency scaling
        transcendentals=6 * levels * n_pad,            # sin + cos per coord / level
        bytes_accessed=(3 + out_dim) * 4 * n_pad)      # ~120 B/pt

    return pl.pallas_call(
        kernel,
        out_shape=out_shape,
        grid_spec=pltpu.PrefetchScalarGridSpec(
            num_scalar_prefetch=0,
            grid=(grid,),
            in_specs=[pl.BlockSpec((3, tile), lambda i: (0, i))],
            out_specs=out_spec,
        ),
        compiler_params=pltpu.CompilerParams(
            dimension_semantics=("parallel",)),        # shard steps across v7x TCs
        cost_estimate=cost,
    )(xt)


@functools.cache
def _in_kernel_transpose_ok(levels: int, out_dim: int) -> bool:
    """One-time tiny probe: does the in-kernel transpose lower on this backend?"""
    try:
        probe = jnp.zeros((3, 128), jnp.float32)
        jax.block_until_ready(_encode(probe, 128, 128, 1, levels, out_dim, True))
        return True
    except Exception:
        return False


def point_encoder(poi_xyz: jax.Array, levels: int, *, tn: int = 8192) -> jax.Array:
    """JAX/Pallas equivalent of Point_Encoder(levels).forward(poi_xyz)."""
    x = jnp.reshape(poi_xyz, (-1, 3)).astype(jnp.float32)
    n = x.shape[0]
    out_dim = 3 + 6 * levels
    if n == 0:                                          # empty-input guard
        return jnp.zeros((0, out_dim), jnp.float32)

    # Lane tiling: multiples of 128, tile fitted to N (minimal padding), and at
    # least 2 grid steps for N >= 256 so both v7x TensorCores get work.
    n128 = pl.cdiv(n, 128) * 128
    tile_pref = max(128, (tn // 128) * 128)
    grid = pl.cdiv(n128, tile_pref)
    if n128 >= 256:
        grid = max(grid, 2)
    tile = pl.cdiv(n128 // 128, grid) * 128
    n_pad = grid * tile

    # TODO(synk): accept a channel-major [3, N] point cloud upstream (or fuse this
    # encoder into the consumer's first-layer matmul kernel) to drop this small
    # transpose+pad HBM pass (~24 B/pt) as well.
    xt = x.T
    if n_pad != n:
        xt = jnp.pad(xt, ((0, 0), (0, n_pad - n)))

    if _in_kernel_transpose_ok(levels, out_dim):
        out = _encode(xt, n_pad, tile, grid, levels, out_dim, True)      # [n_pad, C]
    else:
        out = _encode(xt, n_pad, tile, grid, levels, out_dim, False).T   # fallback
    return out[:n] if n_pad != n else out


def point_encoder_ref(poi_xyz: jax.Array, levels: int) -> jax.Array:
    """Pure-JAX reference mirroring the PyTorch module."""
    x = jnp.reshape(poi_xyz, (-1, 3)).astype(jnp.float32)
    encodings = [x]
    for i in range(levels):
        med = (2.0 ** i) * math.pi * x
        encodings.append(jnp.concatenate([jnp.sin(med), jnp.cos(med)], axis=-1))
    return jnp.concatenate(encodings, axis=-1)


if __name__ == "__main__":
    levels = 4
    key = jax.random.PRNGKey(0)
    # Small point cloud: batch=2, 8 points each, xyz coords -> reshapes to [16, 3].
    poi_xyz = jax.random.uniform(
        key, (2, 8, 3), dtype=jnp.float32, minval=-1.0, maxval=1.0)

    out = point_encoder(poi_xyz, levels)
    out = jax.block_until_ready(out)

    ref = point_encoder_ref(poi_xyz, levels)
    assert out.shape == (16, 3 + 6 * levels), out.shape
    assert jnp.allclose(out, ref, atol=1e-5, rtol=1e-5), "mismatch vs reference"

    print("KERNEL_OK")
</pallas_src>

<mosaic_0001>
module attributes {stable_mosaic.version = 11 : i64} {
  func.func @kernel(%arg0: i32, %arg1: memref<3x128xf32, #tpu.memory_space<vmem>>, %arg2: memref<128x27xf32, #tpu.memory_space<vmem>>) attributes {dimension_semantics = [#tpu.dimension_semantics<parallel>], iteration_bounds = array<i64: 1>, scalar_prefetch = 0 : i64, scratch_operands = 0 : i64, tpu.core_type = #tpu.core_type<tc>, window_params = [{transform_indices = @transform_0, window_bounds = array<i64: 3, 128>}, {transform_indices = @transform_1, window_bounds = array<i64: 128, 27>}]} {
    %c0 = arith.constant 0 : index
    %c0_0 = arith.constant 0 : index
    %0 = vector.load %arg1[%c0, %c0_0] : memref<3x128xf32, #tpu.memory_space<vmem>>, vector<3x128xf32>
    %cst = arith.constant 3.14159274 : f32
    %1 = vector.broadcast %cst : f32 to vector<3x128xf32>
    %2 = arith.mulf %1, %0 : vector<3x128xf32>
    %cst_1 = arith.constant 6.28318548 : f32
    %3 = vector.broadcast %cst_1 : f32 to vector<3x128xf32>
    %4 = arith.mulf %3, %0 : vector<3x128xf32>
    %cst_2 = arith.constant 12.566371 : f32
    %5 = vector.broadcast %cst_2 : f32 to vector<3x128xf32>
    %6 = arith.mulf %5, %0 : vector<3x128xf32>
    %cst_3 = arith.constant 25.1327419 : f32
    %7 = vector.broadcast %cst_3 : f32 to vector<3x128xf32>
    %8 = arith.mulf %7, %0 : vector<3x128xf32>
    %9 = tpu.concatenate %2, %4, %6, %8 in 0 : vector<3x128xf32>, vector<3x128xf32>, vector<3x128xf32>, vector<3x128xf32> -> vector<12x128xf32>
    %10 = math.sin %9 : vector<12x128xf32>
    %11 = math.cos %9 : vector<12x128xf32>
    %12 = vector.extract_strided_slice %10 {offsets = [0, 0], sizes = [3, 128], strides = [1, 1]} : vector<12x128xf32> to vector<3x128xf32>
    %13 = vector.extract_strided_slice %11 {offsets = [0, 0], sizes = [3, 128], strides = [1, 1]} : vector<12x128xf32> to vector<3x128xf32>
    %14 = vector.extract_strided_slice %10 {offsets = [3, 0], sizes = [3, 128], strides = [1, 1]} : vector<12x128xf32> to vector<3x128xf32>
    %15 = vector.extract_strided_slice %11 {offsets = [3, 0], sizes = [3, 128], strides = [1, 1]} : vector<12x128xf32> to vector<3x128xf32>
    %16 = vector.extract_strided_slice %10 {offsets = [6, 0], sizes = [3, 128], strides = [1, 1]} : vector<12x128xf32> to vector<3x128xf32>
    %17 = vector.extract_strided_slice %11 {offsets = [6, 0], sizes = [3, 128], strides = [1, 1]} : vector<12x128xf32> to vector<3x128xf32>
    %18 = vector.extract_strided_slice %10 {offsets = [9, 0], sizes = [3, 128], strides = [1, 1]} : vector<12x128xf32> to vector<3x128xf32>
    %19 = vector.extract_strided_slice %11 {offsets = [9, 0], sizes = [3, 128], strides = [1, 1]} : vector<12x128xf32> to vector<3x128xf32>
    %cst_4 = arith.constant 0.000000e+00 : f32
    %20 = vector.broadcast %cst_4 : f32 to vector<5x128xf32>
    %21 = tpu.concatenate %0, %12, %13, %14, %15, %16, %17, %18, %19, %20 in 0 : vector<3x128xf32>, vector<3x128xf32>, vector<3x128xf32>, vector<3x128xf32>, vector<3x128xf32>, vector<3x128xf32>, vector<3x128xf32>, vector<3x128xf32>, vector<3x128xf32>, vector<5x128xf32> -> vector<32x128xf32>
    %22 = tpu.transpose %21, [1, 0] : vector<32x128xf32> -> vector<128x32xf32>
    %23 = vector.extract_strided_slice %22 {offsets = [0, 0], sizes = [128, 27], strides = [1, 1]} : vector<128x32xf32> to vector<128x27xf32>
    %c0_5 = arith.constant 0 : index
    %c0_6 = arith.constant 0 : index
    %24 = vector.load %arg2[%c0_5, %c0_6] : memref<128x27xf32, #tpu.memory_space<vmem>>, vector<128x27xf32>
    tpu.vector_store %arg2[%c0_5, %c0_6], %23 {strides = array<i32>} : memref<128x27xf32, #tpu.memory_space<vmem>>, vector<128x27xf32>,
    return
  }
  func.func @transform_0(%arg0: i32) -> (i32, i32) {
    %c0_i32 = arith.constant 0 : i32
    %c0_i32_0 = arith.constant 0 : i32
    return %c0_i32, %arg0 : i32, i32
  }
  func.func @transform_1(%arg0: i32) -> (i32, i32) {
    %c0_i32 = arith.constant 0 : i32
    %c0_i32_0 = arith.constant 0 : i32
    return %arg0, %c0_i32 : i32, i32
  }
}

module attributes {stable_mosaic.version = 11 : i64} {
  func.func @kernel(%arg0: i32, %arg1: memref<3x128xf32, #tpu.memory_space<vmem>>, %arg2: memref<27x128xf32, #tpu.memory_space<vmem>>) attributes {dimension_semantics = [#tpu.dimension_semantics<parallel>], iteration_bounds = array<i64: 1>, scalar_prefetch = 0 : i64, scratch_operands = 0 : i64, tpu.core_type = #tpu.core_type<tc>, window_params = [{transform_indices = @transform_0, window_bounds = array<i64: 3, 128>}, {transform_indices = @transform_1, window_bounds = array<i64: 27, 128>}]} {
    %c0 = arith.constant 0 : index
    %c0_0 = arith.constant 0 : index
    %0 = vector.load %arg1[%c0, %c0_0] : memref<3x128xf32, #tpu.memory_space<vmem>>, vector<3x128xf32>
    %cst = arith.constant 3.14159274 : f32
    %1 = vector.broadcast %cst : f32 to vector<3x128xf32>
    %2 = arith.mulf %1, %0 : vector<3x128xf32>
    %cst_1 = arith.constant 6.28318548 : f32
    %3 = vector.broadcast %cst_1 : f32 to vector<3x128xf32>
    %4 = arith.mulf %3, %0 : vector<3x128xf32>
    %cst_2 = arith.constant 12.566371 : f32
    %5 = vector.broadcast %cst_2 : f32 to vector<3x128xf32>
    %6 = arith.mulf %5, %0 : vector<3x128xf32>
    %cst_3 = arith.constant 25.1327419 : f32
    %7 = vector.broadcast %cst_3 : f32 to vector<3x128xf32>
    %8 = arith.mulf %7, %0 : vector<3x128xf32>
    %9 = tpu.concatenate %2, %4, %6, %8 in 0 : vector<3x128xf32>, vector<3x128xf32>, vector<3x128xf32>, vector<3x128xf32> -> vector<12x128xf32>
    %10 = math.sin %9 : vector<12x128xf32>
    %11 = math.cos %9 : vector<12x128xf32>
    %12 = vector.extract_strided_slice %10 {offsets = [0, 0], sizes = [3, 128], strides = [1, 1]} : vector<12x128xf32> to vector<3x128xf32>
    %13 = vector.extract_strided_slice %11 {offsets = [0, 0], sizes = [3, 128], strides = [1, 1]} : vector<12x128xf32> to vector<3x128xf32>
    %14 = vector.extract_strided_slice %10 {offsets = [3, 0], sizes = [3, 128], strides = [1, 1]} : vector<12x128xf32> to vector<3x128xf32>
    %15 = vector.extract_strided_slice %11 {offsets = [3, 0], sizes = [3, 128], strides = [1, 1]} : vector<12x128xf32> to vector<3x128xf32>
    %16 = vector.extract_strided_slice %10 {offsets = [6, 0], sizes = [3, 128], strides = [1, 1]} : vector<12x128xf32> to vector<3x128xf32>
    %17 = vector.extract_strided_slice %11 {offsets = [6, 0], sizes = [3, 128], strides = [1, 1]} : vector<12x128xf32> to vector<3x128xf32>
    %18 = vector.extract_strided_slice %10 {offsets = [9, 0], sizes = [3, 128], strides = [1, 1]} : vector<12x128xf32> to vector<3x128xf32>
    %19 = vector.extract_strided_slice %11 {offsets = [9, 0], sizes = [3, 128], strides = [1, 1]} : vector<12x128xf32> to vector<3x128xf32>
    %cst_4 = arith.constant 0.000000e+00 : f32
    %20 = vector.broadcast %cst_4 : f32 to vector<5x128xf32>
    %21 = tpu.concatenate %0, %12, %13, %14, %15, %16, %17, %18, %19, %20 in 0 : vector<3x128xf32>, vector<3x128xf32>, vector<3x128xf32>, vector<3x128xf32>, vector<3x128xf32>, vector<3x128xf32>, vector<3x128xf32>, vector<3x128xf32>, vector<3x128xf32>, vector<5x128xf32> -> vector<32x128xf32>
    %22 = vector.extract_strided_slice %21 {offsets = [0, 0], sizes = [27, 128], strides = [1, 1]} : vector<32x128xf32> to vector<27x128xf32>
    %c0_5 = arith.constant 0 : index
    %c0_6 = arith.constant 0 : index
    %23 = vector.load %arg2[%c0_5, %c0_6] : memref<27x128xf32, #tpu.memory_space<vmem>>, vector<27x128xf32>
    tpu.vector_store %arg2[%c0_5, %c0_6], %22 {strides = array<i32>} : memref<27x128xf32, #tpu.memory_space<vmem>>, vector<27x128xf32>,
    return
  }
  func.func @transform_0(%arg0: i32) -> (i32, i32) {
    %c0_i32 = arith.constant 0 : i32
    %c0_i32_0 = arith.constant 0 : i32
    return %c0_i32, %arg0 : i32, i32
  }
  func.func @transform_1(%arg0: i32) -> (i32, i32) {
    %c0_i32 = arith.constant 0 : i32
    %c0_i32_0 = arith.constant 0 : i32
    return %c0_i32, %arg0 : i32, i32
  }
}

</mosaic_0001>

<bundles_post_ra>
// kernel: tpu_custom_call.1
= control target key start
LH: loop header
LB: loop body
LE: loop exit
PB: predicated region body
PF: predicated region fallthrough
CT: control target
= control target key end

     0   :  { %6 = vsyncpa [#allocation3], 0  ;;  %s609_s6 = smov [#allocation2]   ;;  %s791_s0 = inlined_call_operand.hbm [shape: f32[3,128], index: 0, kind: input, shape index: {}]   ;;  %s792_s1 = inlined_call_operand.vmem [shape: f32[128,27], index: 1, kind: output, shape index: {}]  }
   0x1   :  { %s13_s7 = sshll.u32 %s609_s6, 4  ;;  %s585_s10 = scalar_lea.hbm %s791_s0, 64  ;;  %s14_s7 = int_to_ptr.vmem [resolvable:$true] %s13_s7 }
   0x2   :  { %p586_p0 = scmp.ne.s32.totalorder %s791_s0, %s585_s10  ;;  %p589_p1 = scmp.lt.u32.totalorder %s585_s10, %s791_s0 }
   0x4   :  { %p591_p2 = pnand %p589_p1, %p586_p0 }
   0x6   :  { %594 = shalt.err (!%p591_p2)
}
   0x7   :  { %s595_s15 = scalar_lea.vmem %s14_s7, 64  ;;  %p600_p4 = scmp.lt.s32.totalorder %s14_s7, %s14_s7 }
   0x8   :  { %p596_p3 = scmp.ne.s32.totalorder %s14_s7, %s595_s15  ;;  %p601_p5 = scmp.lt.s32.totalorder %s595_s15, %s595_s15 }
   0xa   :  { %p602_p6 = por %p601_p5, %p600_p4 }
   0xc   :  { %p603_p7 = pnand %p602_p6, %p596_p3 }
   0xe   :  { %606 = shalt.err (!%p603_p7)
}
   0xf   :  { %16 = dma.hbm_to_vmem [thread:$0]  %s791_s0, 64, %s14_s7, [#allocation3]  }
  0x10   :  { %607 = dma.done.wait [#allocation3], 64  }
  0x11   :  { %608 = vsyncadd [#allocation3], 4294967232  ;;  %v638_v0 = vld [vmem:[#allocation2] sm:$0x7]  ;;  %vm34_vm0 = vcmask 1042432   ;;  %vm36_vm1 = vcmask 1045504  }
  0x12   :  { %v21_v1 = vmul.f32 3.1415927, %v638_v0  ;;  %v22_v2 = vmul.f32 6.2831855, %v638_v0  ;;  %v23_v3 = vmul.f32 12.566371, %v638_v0 }
  0x13   :  { %v24_v4 = vmul.f32 25.132742, %v638_v0  ;;  %vm38_vm2 = vcmask 1040384   ;;  %v610_v33 = vmov 683565275  }
  0x14   :  { %v26_v5 = vrot.slane %v22_v2, 5  ;;  %v29_v6 = vrot.slane %v23_v3, 2  ;;  %v611_v35 = vmov 2475754826   ;;  %v612_v37 = vmov 2131351028  }
  0x15   :  { %v32_v7 = vrot.slane %v24_v4, 7  ;;  %v613_v39 = vmov 2102212464   ;;  %v614_v41 = vmov 920167782  }
  0x16   :  { %v35_v8 = vsel %vm34_vm0, %v21_v1, %v26_v5  ;;  %v615_v49 = vmov 1326507024  }
  0x17   :  { %v646_v9 = vsel %vm36_vm1, %v35_v8, %v29_v6  ;;  %v649_v10 = vsel %vm38_vm2, %v29_v6, %v32_v7 }
  0x18   :  { %v40_v11 = vand.u32 2147483647, %v646_v9  ;;  %v43_v12 = vand.u32 2139095040, %v646_v9  ;;  %v144_v13 = vand.u32 2147483647, %v649_v10  ;;  %v147_v14 = vand.u32 2139095040, %v649_v10 }
  0x1a   :  { %v44_v15 = vshrl.u32 %v43_v12, 23  ;;  %v47_v16 = vand.u32 8388607, %v40_v11  ;;  %v148_v17 = vshrl.u32 %v147_v14, 23  ;;  %v151_v18 = vand.u32 8388607, %v144_v13 }
  0x1c   :  { %v545_v19 = vadd.s32 4294967169, %v44_v15  ;;  %v549_v20 = vadd.s32 4294967169, %v148_v17  ;;  %v48_v22 = vor.u32 8388608, %v47_v16  ;;  %v152_v23 = vor.u32 8388608, %v151_v18 }
  0x1e   :  { %v50_v21 = vadd.s32 1, %v545_v19  ;;  %v154_v24 = vadd.s32 1, %v549_v20  ;;  %v659_v29 = vshll.u32 %v48_v22, 8  ;;  %v661_v31 = vshll.u32 %v152_v23, 8 }
  0x20   :  { %vm51_vm3 = vcmp.gt.s32.totalorder %v50_v21, 0  ;;  %vm155_vm4 = vcmp.gt.s32.totalorder %v154_v24, 0 }
  0x21   :  { %v52_v25 = vsel %vm51_vm3, %v50_v21, 0  ;;  %v156_v28 = vsel %vm155_vm4, %v154_v24, 0  ;;  %vm42_vm4 = vcmp.lt.s32.totalorder %v646_v9, 0 }
  0x22   :  { %v53_v26 = vshrl.u32 %v52_v25, 5  ;;  %v54_v27 = vand.u32 31, %v52_v25  ;;  %v158_v30 = vand.u32 31, %v156_v28  ;;  %v663_v43 = vshrl.u32 %v156_v28, 5 }
  0x24   :  { %v55_v32 = vsub.s32 32, %v54_v27  ;;  %v57_v34 = vshll.u32 %v610_v33, %v54_v27  ;;  %v60_v36 = vshll.u32 %v611_v35, %v54_v27  ;;  %v63_v38 = vshll.u32 %v612_v37, %v54_v27 }
  0x25   :  { %v66_v40 = vshll.u32 %v613_v39, %v54_v27  ;;  %v69_v42 = vshll.u32 %v614_v41, %v54_v27  ;;  %vm72_vm5 = vcmp.lt.s32.totalorder %v53_v26, 1  ;;  %vm73_vm6 = vcmp.lt.s32.totalorder %v53_v26, 2 }
  0x26   :  { %v56_v44 = vshrl.u32 %v610_v33, %v55_v32  ;;  %v58_v45 = vshrl.u32 %v611_v35, %v55_v32  ;;  %v61_v46 = vshrl.u32 %v612_v37, %v55_v32  ;;  %v64_v47 = vshrl.u32 %v613_v39, %v55_v32 }
  0x27   :  { %v67_v48 = vshrl.u32 %v614_v41, %v55_v32  ;;  %v70_v50 = vshrl.u32 %v615_v49, %v55_v32  ;;  %vm75_vm7 = vcmp.lt.s32.totalorder %v53_v26, 4  ;;  %v159_v54 = vsub.s32 32, %v158_v30 }
  0x28   :  { %v59_v51 = vor.u32 %v58_v45, %v57_v34  ;;  %v62_v52 = vor.u32 %v61_v46, %v60_v36  ;;  %v65_v53 = vor.u32 %v64_v47, %v63_v38  ;;  %vm74_vm8 = vcmp.lt.s32.totalorder %v53_v26, 3 }
  0x29   :  { %v68_v55 = vor.u32 %v67_v48, %v66_v40  ;;  %v71_v56 = vor.u32 %v70_v50, %v69_v42  ;;  %v161_v57 = vshll.u32 %v610_v33, %v158_v30  ;;  %v164_v2 = vshll.u32 %v611_v35, %v158_v30 }
  0x2a   :  { %v76_v58 = vsel %vm72_vm5, %v56_v44, %v59_v51  ;;  %v77_v59 = vsel %vm75_vm7, %v65_v53, 2102212464  ;;  %v80_v60 = vsel %vm72_vm5, %v59_v51, %v62_v52  ;;  %v84_v61 = vsel %vm72_vm5, %v62_v52, %v65_v53 }
  0x2b   :  { %v78_v62 = vsel %vm74_vm8, %v62_v52, %v77_v59  ;;  %v81_v63 = vsel %vm75_vm7, %v68_v55, 920167782  ;;  %v85_v1 = vsel %vm75_vm7, %v71_v56, 1326507024  ;;  %v160_v5 = vshrl.u32 %v610_v33, %v159_v54 }
  0x2c   :  { %v82_v3 = vsel %vm74_vm8, %v65_v53, %v81_v63  ;;  %v86_v4 = vsel %vm74_vm8, %v68_v55, %v85_v1  ;;  %v162_v6 = vshrl.u32 %v611_v35, %v159_v54  ;;  %v79_v7 = vsel %vm73_vm6, %v76_v58, %v78_v62 }
  0x2d   :  { %v83_v8 = vsel %vm73_vm6, %v80_v60, %v82_v3  ;;  %v87_v12 = vsel %vm73_vm6, %v84_v61, %v86_v4  ;;  %v165_v14 = vshrl.u32 %v612_v37, %v159_v54  ;;  %v167_v21 = vshll.u32 %v612_v37, %v158_v30 }
  0x2e   :  { %v672_v15 = vmul.u32.u64.low %v659_v29, %v87_v12  ;;  %v673_v16 = vmul.u32.u64.high %v659_v29, %v87_v12, %v672_v15  ;;  %v676_v17 = vmul.u32.u64.low %v659_v29, %v83_v8  ;;  %v677_v18 = vmul.u32.u64.high %v659_v29, %v83_v8, %v676_v17 }
  0x2f   :  { %v163_v19 = vor.u32 %v162_v6, %v161_v57  ;;  %v166_v20 = vor.u32 %v165_v14, %v164_v2  ;;  %v168_v22 = vshrl.u32 %v613_v39, %v159_v54  ;;  %v170_v23 = vshll.u32 %v613_v39, %v158_v30 }
  0x30   :  { %v171_v24 = vshrl.u32 %v614_v41, %v159_v54  ;;  %v173_v25 = vshll.u32 %v614_v41, %v158_v30  ;;  %v174_v27 = vshrl.u32 %v615_v49, %v159_v54  ;;  %v95_v26 = vmul.u32 %v659_v29, %v79_v7 }
  0x31   :  { %v169_v28 = vor.u32 %v168_v22, %v167_v21  ;;  %vm176_vm9 = vcmp.lt.s32.totalorder %v663_v43, 1  ;;  %vm177_vm10 = vcmp.lt.s32.totalorder %v663_v43, 2  ;;  %vm97_vm11 = vc.u32 %v673_v16, %v676_v17 }
  0x32   :  { %v98_v32 = vadd.s32 1, %v677_v18  ;;  %v172_v33 = vor.u32 %v171_v24, %v170_v23  ;;  %vm178_vm12 = vcmp.lt.s32.totalorder %v663_v43, 3  ;;  %v175_v34 = vor.u32 %v174_v27, %v173_v25 }
  0x33   :  { %vm179_vm13 = vcmp.lt.s32.totalorder %v663_v43, 4  ;;  %v180_v35 = vsel %vm176_vm9, %v160_v5, %v163_v19  ;;  %v184_v30 = vsel %vm176_vm9, %v163_v19, %v166_v20  ;;  %v188_v38 = vsel %vm176_vm9, %v166_v20, %v169_v28 }
  0x34   :  { %v99_v36 = vsel %vm97_vm11, %v98_v32, %v677_v18  ;;  %v181_v29 = vsel %vm179_vm13, %v169_v28, 2102212464  ;;  %v185_v37 = vsel %vm179_vm13, %v172_v33, 920167782  ;;  %v189_v42 = vsel %vm179_vm13, %v175_v34, 1326507024 }
  0x35   :  { %v100_v39 = vadd.s32 %v99_v36, %v95_v26  ;;  %v182_v40 = vsel %vm178_vm12, %v166_v20, %v181_v29  ;;  %v186_v41 = vsel %vm178_vm12, %v169_v28, %v185_v37  ;;  %v190_v46 = vsel %vm178_vm12, %v172_v33, %v189_v42 }
  0x36   :  { %v183_v44 = vsel %vm177_vm10, %v180_v35, %v182_v40  ;;  %v187_v45 = vsel %vm177_vm10, %v184_v30, %v186_v41  ;;  %v191_v48 = vsel %vm177_vm10, %v188_v38, %v190_v46  ;;  %v96_v4 = vadd.s32 %v676_v17, %v673_v16 }
  0x37   :  { %v101_v47 = vadd.s32 536870912, %v100_v39  ;;  %v694_v49 = vmul.u32.u64.low %v661_v31, %v187_v45  ;;  %v695_v50 = vmul.u32.u64.high %v661_v31, %v187_v45, %v694_v49  ;;  %v199_v54 = vmul.u32 %v661_v31, %v183_v44 }
  0x38   :  { %v698_v51 = vmul.u32.u64.low %v661_v31, %v191_v48  ;;  %v699_v52 = vmul.u32.u64.high %v661_v31, %v191_v48, %v698_v51  ;;  %vm41_vm5 = vcmp.le.f32.partialorder %v40_v11, 0.7853982  ;;  %vm146_vm6 = vcmp.lt.s32.totalorder %v649_v10, 0 }
  0x39   :  { %v102_v53 = vshrl.u32 %v101_v47, 30  ;;  %v202_v56 = vadd.s32 1, %v695_v50  ;;  %vm145_vm7 = vcmp.le.f32.partialorder %v144_v13, 0.7853982 }
  0x3a   :  { %vm201_vm14 = vc.u32 %v699_v52, %v694_v49  ;;  %v200_v24 = vadd.s32 %v694_v49, %v699_v52 }
  0x3b   :  { %v103_v55 = vshll.u32 %v102_v53, 30  ;;  %v203_v43 = vsel %vm201_vm14, %v202_v56, %v695_v50  ;;  %v126_v16 = vsub.s32 4, %v102_v53  ;;  %vm132_vm14 = vweird.f32 %v646_v9 }
  0x3c   :  { %v204_v58 = vadd.s32 %v203_v43, %v199_v54 }
  0x3d   :  { %v104_v57 = vsub.s32 %v100_v39, %v103_v55  ;;  %v127_v30 = vsel %vm42_vm4, %v126_v16, %v102_v53 }
  0x3e   :  { %v205_v60 = vadd.s32 536870912, %v204_v58  ;;  %v129_v39 = vsel %vm41_vm5, 0, %v127_v30 }
  0x3f   :  { %v106_v59 = vsub.s32 0, %v104_v57  ;;  %v133_v45 = vadd.s32 3, %v129_v39  ;;  %v341_v49 = vand.u32 3, %v129_v39 }
  0x40   :  { %v206_v62 = vshrl.u32 %v205_v60, 30 }
  0x41   :  { %v546_v61 = vmin.u32 %v106_v59, %v104_v57  ;;  %v134_v48 = vand.u32 3, %v133_v45  ;;  %vm346_vm9 = vcmp.eq.s32.totalorder %v341_v49, 2  ;;  %vm343_vm11 = vcmp.eq.s32.totalorder %v341_v49, 0 }
  0x42   :  { %v207_v1 = vshll.u32 %v206_v62, 30  ;;  %v230_v44 = vsub.s32 4, %v206_v62  ;;  %vm342_vm13 = vcmp.lt.s32.totalorder %v341_v49, 2 }
  0x43   :  { %v108_v63 = vclz %v546_v61  ;;  %vm139_vm8 = vcmp.eq.s32.totalorder %v134_v48, 2  ;;  %vm136_vm10 = vcmp.eq.s32.totalorder %v134_v48, 0  ;;  %vm135_vm12 = vcmp.lt.s32.totalorder %v134_v48, 2 }
  0x44   :  { %v208_v3 = vsub.s32 %v204_v58, %v207_v1  ;;  %v231_v47 = vsel %vm146_vm6, %v230_v44, %v206_v62 }
  0x45   :  { %v547_v2 = vadd.s32 4294967294, %v108_v63  ;;  %v233_v52 = vsel %vm145_vm7, 0, %v231_v47 }
  0x46   :  { %v210_v5 = vsub.s32 0, %v208_v3  ;;  %v237_v56 = vadd.s32 3, %v233_v52  ;;  %v444_v60 = vand.u32 3, %v233_v52 }
  0x47   :  { %vm548_vm15 = vcmp.lt.s32.totalorder %v547_v2, 0 }
  0x48   :  { %v111_v31 = vsel %vm548_vm15, 0, %v547_v2  ;;  %v550_v12 = vmin.u32 %v210_v5, %v208_v3  ;;  %v238_v63 = vand.u32 3, %v237_v56  ;;  %vm471_vm15 = vcmask 1043456  }
  0x49   :  { %v112_v6 = vsub.s32 32, %v111_v31  ;;  %v113_v7 = vshll.u32 %v104_v57, %v111_v31  ;;  %v116_v8 = vsub.s32 4294967266, %v111_v31 }
  0x4a   :  { %v212_v18 = vclz %v550_v12 }
  0x4b   :  { %v114_v14 = vshrl.u32 %v96_v4, %v112_v6  ;;  %v117_v15 = vadd.s32 127, %v116_v8 }
  0x4c   :  { %v551_v21 = vadd.s32 4294967294, %v212_v18 }
  0x4d   :  { %v115_v19 = vor.u32 %v114_v14, %v113_v7  ;;  %v118_v20 = vshll.u32 %v117_v15, 23 }
  0x4e   :  { %vm552_vm3 = vcmp.lt.s32.totalorder %v551_v21, 0 }
  0x4f   :  { %v119_v22 = vor.u32 4788187, %v118_v20  ;;  %v122_v23 = vcvt.s32.f32 %v115_v19  ;;  %v215_v17 = vsel %vm552_vm3, 0, %v551_v21  ;;  %vm484_vm3 = vcmask 1046528  }
  0x50   :  { %v216_v27 = vsub.s32 32, %v215_v17  ;;  %v217_v26 = vshll.u32 %v208_v3, %v215_v17  ;;  %v220_v28 = vsub.s32 4294967266, %v215_v17 }
  0x51   :  { %v120_v25 = vand.u32 2147483647, %v119_v22 }
  0x52   :  { %v218_v33 = vshrl.u32 %v200_v24, %v216_v27  ;;  %v221_v34 = vadd.s32 127, %v220_v28 }
  0x53   :  { %v123_v32 = vmul.f32 %v122_v23, %v120_v25 }
  0x54   :  { %v219_v36 = vor.u32 %v218_v33, %v217_v26  ;;  %v222_v29 = vshll.u32 %v221_v34, 23 }
  0x55   :  { %v124_v35 = vxor.u32 2147483648, %v123_v32 }
  0x56   :  { %v223_v40 = vor.u32 4788187, %v222_v29  ;;  %v226_v41 = vcvt.s32.f32 %v219_v36 }
  0x57   :  { %v125_v37 = vsel %vm42_vm4, %v124_v35, %v123_v32  ;;  %vm446_vm4 = vcmp.eq.s32.totalorder %v444_v60, 0 }
  0x58   :  { %v128_v38 = vsel %vm41_vm5, %v646_v9, %v125_v37  ;;  %v224_v42 = vand.u32 2147483647, %v223_v40  ;;  %vm243_vm5 = vcmp.eq.s32.totalorder %v238_v63, 2 }
  0x59   :  { %577 = vcosq.f32 %v128_v38 }
  0x5a   :  { %579 = vsinq.f32 %v128_v38  ;;  %v227_v46 = vmul.f32 %v226_v41, %v224_v42 }
  0x5c   :  { %v228_v11 = vxor.u32 2147483648, %v227_v46 }
  0x5e   :  { %v229_v50 = vsel %vm146_vm6, %v228_v11, %v227_v46  ;;  %vm449_vm6 = vcmp.eq.s32.totalorder %v444_v60, 2 }
  0x5f   :  { %v232_v51 = vsel %vm145_vm7, %v649_v10, %v229_v50  ;;  %vm240_vm7 = vcmp.eq.s32.totalorder %v238_v63, 0 }
  0x60   :  { %581 = vcosq.f32 %v232_v51 }
  0x61   :  { %583 = vsinq.f32 %v232_v51 }
  0x63   :  { %v578_v53 = vpop.eup %577 }
  0x64   :  { %v580_v54 = vpop.eup %579  ;;  %v140_v55 = vxor.u32 2147483648, %v578_v53 }
  0x65   :  { %v137_v13 = vxor.u32 2147483648, %v580_v54 }
  0x66   :  { %v141_v57 = vsel %vm139_vm8, %v140_v55, %v580_v54  ;;  %v348_v43 = vsel %vm346_vm9, %v140_v55, %v580_v54  ;;  %vm239_vm8 = vcmp.lt.s32.totalorder %v238_v63, 2  ;;  %vm445_vm9 = vcmp.lt.s32.totalorder %v444_v60, 2 }
  0x67   :  { %v138_v58 = vsel %vm136_vm10, %v578_v53, %v137_v13  ;;  %v345_v59 = vsel %vm343_vm11, %v578_v53, %v137_v13  ;;  %vm236_vm10 = vweird.f32 %v649_v10  ;;  %vm488_vm11 = vcmask 1044480  }
  0x68   :  { %v142_v61 = vsel %vm135_vm12, %v138_v58, %v141_v57  ;;  %v349_v62 = vsel %vm342_vm13, %v345_v59, %v348_v43  ;;  %vm523_vm12 = vcmask 220160  }
  0x69   :  { %v143_v1 = vsel %vm132_vm14, nan, %v142_v61  ;;  %v350_v2 = vsel %vm132_vm14, nan, %v349_v62 }
  0x6a   :  { %v455_v3 = vrot.slane %v143_v1, 5  ;;  %v458_v4 = vrot.slane %v350_v2, 2  ;;  %v460_v31 = vrot.slane %v143_v1, 2  ;;  %v462_v5 = vrot.slane %v350_v2, 7  ;;  %v582_v7 = vpop.eup %581 }
  0x6b   :  { %v465_v6 = vrot.slane %v143_v1, 7  ;;  %v584_v12 = vpop.eup %583  ;;  %v244_v18 = vxor.u32 2147483648, %v582_v7  ;;  %v472_v24 = vrot.slane %v350_v2, 4 }
  0x6c   :  { %v480_v9 = vsel %vm34_vm0, %v638_v0, %v455_v3  ;;  %v482_v8 = vsel %vm38_vm2, %v458_v4, %v460_v31  ;;  %v241_v19 = vxor.u32 2147483648, %v584_v12 }
  0x6d   :  { %v481_v14 = vsel %vm36_vm1, %v480_v9, %v458_v4  ;;  %v483_v15 = vsel %vm471_vm15, %v482_v8, %v462_v5  ;;  %v245_v0 = vsel %vm243_vm5, %v244_v18, %v584_v12  ;;  %v451_v21 = vsel %vm449_vm6, %v244_v18, %v584_v12 }
  0x6e   :  { %491 = vxpose.xlu0.b32.start [1/4] (short) %v481_v14, 128  ;;  %v485_v20 = vsel %vm484_vm3, %v483_v15, %v465_v6  ;;  %v242_v22 = vsel %vm240_vm7, %v582_v7, %v241_v19  ;;  %v448_v23 = vsel %vm446_vm4, %v582_v7, %v241_v19  ;;  %vm486_vm1 = vcmask 1041408  }
  0x6f   :  { %v246_v25 = vsel %vm239_vm8, %v242_v22, %v245_v0  ;;  %v452_v16 = vsel %vm445_vm9, %v448_v23, %v451_v21 }
  0x70   :  { %v247_v17 = vsel %vm236_vm10, nan, %v246_v25  ;;  %v453_v27 = vsel %vm236_vm10, nan, %v452_v16 }
  0x71   :  { %v466_v26 = vrot.slane %v247_v17, 7  ;;  %v473_v28 = vrot.slane %v453_v27, 4  ;;  %v476_v32 = vrot.slane %v247_v17, 4  ;;  %v478_v34 = vrot.slane %v453_v27, 1 }
  0x72   :  { %492 = vxpose.xlu0.b32.cont [2/4] (short) %v485_v20, 128 }
  0x73   :  { %v467_v33 = vsel %vm38_vm2, %v465_v6, %v466_v26  ;;  %v474_v10 = vsel %vm471_vm15, %v472_v24, %v473_v28  ;;  %v490_v36 = vsel %vm34_vm0, %v478_v34, 0.0 }
  0x74   :  { %v487_v35 = vsel %vm486_vm1, %v467_v33, %v474_v10 }
  0x75   :  { %v489_v30 = vsel %vm488_vm11, %v487_v35, %v476_v32 }
  0x76   :  { %493 = vxpose.xlu0.b32.cont [3/4] (short) %v489_v30, 128 }
  0x7a   :  { %494 = vxpose.xlu0.b32.end [4/4] (short) %v490_v36, 128 }
  0xee   :  { %v507_v29 = vpop.trf.xlu0 }
  0xef   :  { %524 = vst.msk [vmem:[%s792_s1] sm:$0xff] %vm523_vm12, %v507_v29 }
  0xf2   :  { %v508_v37 = vpop.trf.xlu0 }
  0xf3   :  { %525 = vst.msk [vmem:[%s792_s1 + $0x8] sm:$0xff] %vm523_vm12, %v508_v37 }
  0xf6   :  { %v509_v38 = vpop.trf.xlu0 }
  0xf7   :  { %526 = vst.msk [vmem:[%s792_s1 + $0x10] sm:$0xff] %vm523_vm12, %v509_v38 }
  0xfa   :  { %v510_v39 = vpop.trf.xlu0 }
  0xfb   :  { %527 = vst.msk [vmem:[%s792_s1 + $0x18] sm:$0xff] %vm523_vm12, %v510_v39 }
  0xfe   :  { %v511_v40 = vpop.trf.xlu0 }
  0xff   :  { %528 = vst.msk [vmem:[%s792_s1 + $0x20] sm:$0xff] %vm523_vm12, %v511_v40 }
 0x102   :  { %v512_v41 = vpop.trf.xlu0 }
 0x103   :  { %529 = vst.msk [vmem:[%s792_s1 + $0x28] sm:$0xff] %vm523_vm12, %v512_v41 }
 0x106   :  { %v513_v42 = vpop.trf.xlu0 }
 0x107   :  { %530 = vst.msk [vmem:[%s792_s1 + $0x30] sm:$0xff] %vm523_vm12, %v513_v42 }
 0x10a   :  { %v514_v44 = vpop.trf.xlu0 }
 0x10b   :  { %531 = vst.msk [vmem:[%s792_s1 + $0x38] sm:$0xff] %vm523_vm12, %v514_v44 }
 0x10e   :  { %v515_v45 = vpop.trf.xlu0 }
 0x10f   :  { %532 = vst.msk [vmem:[%s792_s1 + $0x40] sm:$0xff] %vm523_vm12, %v515_v45 }
 0x112   :  { %v516_v46 = vpop.trf.xlu0 }
 0x113   :  { %533 = vst.msk [vmem:[%s792_s1 + $0x48] sm:$0xff] %vm523_vm12, %v516_v46 }
 0x116   :  { %v517_v11 = vpop.trf.xlu0 }
 0x117   :  { %534 = vst.msk [vmem:[%s792_s1 + $0x50] sm:$0xff] %vm523_vm12, %v517_v11 }
 0x11a   :  { %v518_v47 = vpop.trf.xlu0 }
 0x11b   :  { %535 = vst.msk [vmem:[%s792_s1 + $0x58] sm:$0xff] %vm523_vm12, %v518_v47 }
 0x11e   :  { %v519_v48 = vpop.trf.xlu0 }
 0x11f   :  { %536 = vst.msk [vmem:[%s792_s1 + $0x60] sm:$0xff] %vm523_vm12, %v519_v48 }
 0x122   :  { %v520_v49 = vpop.trf.xlu0 }
 0x123   :  { %537 = vst.msk [vmem:[%s792_s1 + $0x68] sm:$0xff] %vm523_vm12, %v520_v49 }
 0x126   :  { %v521_v50 = vpop.trf.xlu0 }
 0x127   :  { %538 = vst.msk [vmem:[%s792_s1 + $0x70] sm:$0xff] %vm523_vm12, %v521_v50 }
 0x12a   :  { %v522_v51 = vpop.trf.xlu0 }
 0x12b   :  { %539 = vst.msk [vmem:[%s792_s1 + $0x78] sm:$0xff] %vm523_vm12, %v522_v51 }
 0x12c   :  { %544 = vsyncpa [#allocation3], 1 }

// kernel: tpu_custom_call.1
= control target key start
LH: loop header
LB: loop body
LE: loop exit
PB: predicated region body
PF: predicated region fallthrough
CT: control target
= control target key end

     0   :  { %6 = vsyncpa [#allocation3], 0  ;;  %s736_s0 = inlined_call_operand.hbm [shape: f32[3,128], index: 0, kind: input, shape index: {}]   ;;  %s737_s1 = inlined_call_operand.hbm [shape: f32[27,128], index: 1, kind: output, shape index: {}]  }
   0x1   :  { %7 = vsyncpa [#allocation4], 0  ;;  %s603_s6 = smov [#allocation2]   ;;  %s555_s10 = scalar_lea.hbm %s736_s0, 64 }
   0x2   :  { %s14_s7 = sshll.u32 %s603_s6, 4  ;;  %p556_p0 = scmp.ne.s32.totalorder %s736_s0, %s555_s10  ;;  %s15_s7 = int_to_ptr.vmem [resolvable:$true] %s14_s7 }
   0x3   :  { %p559_p1 = scmp.lt.u32.totalorder %s555_s10, %s736_s0 }
   0x5   :  { %p561_p2 = pnand %p559_p1, %p556_p0 }
   0x7   :  { %564 = shalt.err (!%p561_p2)
}
   0x8   :  { %s565_s15 = scalar_lea.vmem %s15_s7, 64  ;;  %p570_p4 = scmp.lt.s32.totalorder %s15_s7, %s15_s7 }
   0x9   :  { %p566_p3 = scmp.ne.s32.totalorder %s15_s7, %s565_s15  ;;  %p571_p5 = scmp.lt.s32.totalorder %s565_s15, %s565_s15 }
   0xb   :  { %p572_p6 = por %p571_p5, %p570_p4 }
   0xd   :  { %p573_p7 = pnand %p572_p6, %p566_p3 }
   0xf   :  { %576 = shalt.err (!%p573_p7)
}
  0x10   :  { %17 = dma.hbm_to_vmem [thread:$0]  %s736_s0, 64, %s15_s7, [#allocation3]  }
  0x11   :  { %599 = dma.done.wait [#allocation3], 64  }
  0x12   :  { %600 = vsyncadd [#allocation3], 4294967232  ;;  %v635_v0 = vld [vmem:[#allocation2] sm:$0x7]  ;;  %vm35_vm0 = vcmask 1042432   ;;  %vm37_vm1 = vcmask 1045504  }
  0x13   :  { %v22_v1 = vmul.f32 3.1415927, %v635_v0  ;;  %v23_v2 = vmul.f32 6.2831855, %v635_v0  ;;  %v24_v3 = vmul.f32 12.566371, %v635_v0 }
  0x14   :  { %v25_v4 = vmul.f32 25.132742, %v635_v0  ;;  %vm39_vm2 = vcmask 1040384   ;;  %v604_v33 = vmov 683565275   ;;  %s610_s0 = smov [#allocation5]  }
  0x15   :  { %v27_v5 = vrot.slane %v23_v2, 5  ;;  %v30_v6 = vrot.slane %v24_v3, 2  ;;  %v605_v35 = vmov 2475754826   ;;  %v606_v37 = vmov 2131351028  }
  0x16   :  { %v33_v7 = vrot.slane %v25_v4, 7  ;;  %v607_v39 = vmov 2102212464   ;;  %v608_v41 = vmov 920167782   ;;  %s501_s18 = sshll.u32 %s610_s0, 4  ;;  %s502_s18 = int_to_ptr.vmem [resolvable:$true] %s501_s18 }
  0x17   :  { %v36_v8 = vsel %vm35_vm0, %v22_v1, %v27_v5  ;;  %v609_v49 = vmov 1326507024   ;;  %s577_s19 = scalar_lea.vmem %s502_s18, 512  ;;  %p582_p9 = scmp.lt.s32.totalorder %s502_s18, %s502_s18 }
  0x18   :  { %v643_v9 = vsel %vm37_vm1, %v36_v8, %v30_v6  ;;  %v646_v10 = vsel %vm39_vm2, %v30_v6, %v33_v7  ;;  %p578_p8 = scmp.ne.s32.totalorder %s502_s18, %s577_s19  ;;  %p583_p10 = scmp.lt.s32.totalorder %s577_s19, %s577_s19 }
  0x19   :  { %v41_v11 = vand.u32 2147483647, %v643_v9  ;;  %v44_v12 = vand.u32 2139095040, %v643_v9  ;;  %v145_v13 = vand.u32 2147483647, %v646_v10  ;;  %v148_v14 = vand.u32 2139095040, %v646_v10 }
  0x1a   :  { %p584_p11 = por %p583_p10, %p582_p9 }
  0x1b   :  { %v45_v15 = vshrl.u32 %v44_v12, 23  ;;  %v48_v16 = vand.u32 8388607, %v41_v11  ;;  %v149_v17 = vshrl.u32 %v148_v14, 23  ;;  %v152_v18 = vand.u32 8388607, %v145_v13 }
  0x1c   :  { %p585_p12 = pnand %p584_p11, %p578_p8 }
  0x1d   :  { %v513_v19 = vadd.s32 4294967169, %v45_v15  ;;  %v517_v20 = vadd.s32 4294967169, %v149_v17  ;;  %v49_v22 = vor.u32 8388608, %v48_v16  ;;  %v153_v23 = vor.u32 8388608, %v152_v18 }
  0x1f   :  { %v51_v21 = vadd.s32 1, %v513_v19  ;;  %v155_v24 = vadd.s32 1, %v517_v20  ;;  %v656_v29 = vshll.u32 %v49_v22, 8  ;;  %v658_v31 = vshll.u32 %v153_v23, 8 }
  0x21   :  { %vm52_vm3 = vcmp.gt.s32.totalorder %v51_v21, 0  ;;  %vm156_vm4 = vcmp.gt.s32.totalorder %v155_v24, 0 }
  0x22   :  { %v53_v25 = vsel %vm52_vm3, %v51_v21, 0  ;;  %v157_v28 = vsel %vm156_vm4, %v155_v24, 0  ;;  %vm43_vm4 = vcmp.lt.s32.totalorder %v643_v9, 0 }
  0x23   :  { %v54_v26 = vshrl.u32 %v53_v25, 5  ;;  %v55_v27 = vand.u32 31, %v53_v25  ;;  %v159_v30 = vand.u32 31, %v157_v28  ;;  %v660_v43 = vshrl.u32 %v157_v28, 5 }
  0x25   :  { %v56_v32 = vsub.s32 32, %v55_v27  ;;  %v58_v34 = vshll.u32 %v604_v33, %v55_v27  ;;  %v61_v36 = vshll.u32 %v605_v35, %v55_v27  ;;  %v64_v38 = vshll.u32 %v606_v37, %v55_v27 }
  0x26   :  { %v67_v40 = vshll.u32 %v607_v39, %v55_v27  ;;  %v70_v42 = vshll.u32 %v608_v41, %v55_v27  ;;  %vm73_vm5 = vcmp.lt.s32.totalorder %v54_v26, 1  ;;  %vm74_vm6 = vcmp.lt.s32.totalorder %v54_v26, 2 }
  0x27   :  { %v57_v44 = vshrl.u32 %v604_v33, %v56_v32  ;;  %v59_v45 = vshrl.u32 %v605_v35, %v56_v32  ;;  %v62_v46 = vshrl.u32 %v606_v37, %v56_v32  ;;  %v65_v47 = vshrl.u32 %v607_v39, %v56_v32 }
  0x28   :  { %v68_v48 = vshrl.u32 %v608_v41, %v56_v32  ;;  %v71_v50 = vshrl.u32 %v609_v49, %v56_v32  ;;  %vm76_vm7 = vcmp.lt.s32.totalorder %v54_v26, 4  ;;  %v160_v54 = vsub.s32 32, %v159_v30 }
  0x29   :  { %v60_v51 = vor.u32 %v59_v45, %v58_v34  ;;  %v63_v52 = vor.u32 %v62_v46, %v61_v36  ;;  %v66_v53 = vor.u32 %v65_v47, %v64_v38  ;;  %vm75_vm8 = vcmp.lt.s32.totalorder %v54_v26, 3 }
  0x2a   :  { %v69_v55 = vor.u32 %v68_v48, %v67_v40  ;;  %v72_v56 = vor.u32 %v71_v50, %v70_v42  ;;  %v162_v57 = vshll.u32 %v604_v33, %v159_v30  ;;  %v165_v2 = vshll.u32 %v605_v35, %v159_v30 }
  0x2b   :  { %v77_v58 = vsel %vm73_vm5, %v57_v44, %v60_v51  ;;  %v78_v59 = vsel %vm76_vm7, %v66_v53, 2102212464  ;;  %v81_v60 = vsel %vm73_vm5, %v60_v51, %v63_v52  ;;  %v85_v61 = vsel %vm73_vm5, %v63_v52, %v66_v53 }
  0x2c   :  { %v79_v62 = vsel %vm75_vm8, %v63_v52, %v78_v59  ;;  %v82_v63 = vsel %vm76_vm7, %v69_v55, 920167782  ;;  %v86_v1 = vsel %vm76_vm7, %v72_v56, 1326507024  ;;  %v161_v5 = vshrl.u32 %v604_v33, %v160_v54 }
  0x2d   :  { %v83_v3 = vsel %vm75_vm8, %v66_v53, %v82_v63  ;;  %v87_v4 = vsel %vm75_vm8, %v69_v55, %v86_v1  ;;  %v163_v6 = vshrl.u32 %v605_v35, %v160_v54  ;;  %v80_v7 = vsel %vm74_vm6, %v77_v58, %v79_v62 }
  0x2e   :  { %v84_v8 = vsel %vm74_vm6, %v81_v60, %v83_v3  ;;  %v88_v12 = vsel %vm74_vm6, %v85_v61, %v87_v4  ;;  %v166_v14 = vshrl.u32 %v606_v37, %v160_v54  ;;  %v168_v21 = vshll.u32 %v606_v37, %v159_v30 }
  0x2f   :  { %v669_v15 = vmul.u32.u64.low %v656_v29, %v88_v12  ;;  %v670_v16 = vmul.u32.u64.high %v656_v29, %v88_v12, %v669_v15  ;;  %v673_v17 = vmul.u32.u64.low %v656_v29, %v84_v8  ;;  %v674_v18 = vmul.u32.u64.high %v656_v29, %v84_v8, %v673_v17 }
  0x30   :  { %v164_v19 = vor.u32 %v163_v6, %v162_v57  ;;  %v167_v20 = vor.u32 %v166_v14, %v165_v2  ;;  %v169_v22 = vshrl.u32 %v607_v39, %v160_v54  ;;  %v171_v23 = vshll.u32 %v607_v39, %v159_v30 }
  0x31   :  { %v172_v24 = vshrl.u32 %v608_v41, %v160_v54  ;;  %v174_v25 = vshll.u32 %v608_v41, %v159_v30  ;;  %v175_v27 = vshrl.u32 %v609_v49, %v160_v54  ;;  %v96_v26 = vmul.u32 %v656_v29, %v80_v7 }
  0x32   :  { %v170_v28 = vor.u32 %v169_v22, %v168_v21  ;;  %vm177_vm9 = vcmp.lt.s32.totalorder %v660_v43, 1  ;;  %vm178_vm10 = vcmp.lt.s32.totalorder %v660_v43, 2  ;;  %vm98_vm11 = vc.u32 %v670_v16, %v673_v17 }
  0x33   :  { %v99_v32 = vadd.s32 1, %v674_v18  ;;  %v173_v33 = vor.u32 %v172_v24, %v171_v23  ;;  %vm179_vm12 = vcmp.lt.s32.totalorder %v660_v43, 3  ;;  %v176_v34 = vor.u32 %v175_v27, %v174_v25 }
  0x34   :  { %vm180_vm13 = vcmp.lt.s32.totalorder %v660_v43, 4  ;;  %v181_v35 = vsel %vm177_vm9, %v161_v5, %v164_v19  ;;  %v185_v30 = vsel %vm177_vm9, %v164_v19, %v167_v20  ;;  %v189_v38 = vsel %vm177_vm9, %v167_v20, %v170_v28 }
  0x35   :  { %v100_v36 = vsel %vm98_vm11, %v99_v32, %v674_v18  ;;  %v182_v29 = vsel %vm180_vm13, %v170_v28, 2102212464  ;;  %v186_v37 = vsel %vm180_vm13, %v173_v33, 920167782  ;;  %v190_v42 = vsel %vm180_vm13, %v176_v34, 1326507024 }
  0x36   :  { %v101_v39 = vadd.s32 %v100_v36, %v96_v26  ;;  %v183_v40 = vsel %vm179_vm12, %v167_v20, %v182_v29  ;;  %v187_v41 = vsel %vm179_vm12, %v170_v28, %v186_v37  ;;  %v191_v46 = vsel %vm179_vm12, %v173_v33, %v190_v42 }
  0x37   :  { %v184_v44 = vsel %vm178_vm10, %v181_v35, %v183_v40  ;;  %v188_v45 = vsel %vm178_vm10, %v185_v30, %v187_v41  ;;  %v192_v48 = vsel %vm178_vm10, %v189_v38, %v191_v46  ;;  %v97_v4 = vadd.s32 %v673_v17, %v670_v16 }
  0x38   :  { %v102_v47 = vadd.s32 536870912, %v101_v39  ;;  %v691_v49 = vmul.u32.u64.low %v658_v31, %v188_v45  ;;  %v692_v50 = vmul.u32.u64.high %v658_v31, %v188_v45, %v691_v49  ;;  %v200_v54 = vmul.u32 %v658_v31, %v184_v44 }
  0x39   :  { %v695_v51 = vmul.u32.u64.low %v658_v31, %v192_v48  ;;  %v696_v52 = vmul.u32.u64.high %v658_v31, %v192_v48, %v695_v51  ;;  %vm42_vm5 = vcmp.le.f32.partialorder %v41_v11, 0.7853982  ;;  %vm147_vm6 = vcmp.lt.s32.totalorder %v646_v10, 0 }
  0x3a   :  { %v103_v53 = vshrl.u32 %v102_v47, 30  ;;  %v203_v56 = vadd.s32 1, %v692_v50  ;;  %vm146_vm7 = vcmp.le.f32.partialorder %v145_v13, 0.7853982 }
  0x3b   :  { %vm202_vm14 = vc.u32 %v696_v52, %v691_v49  ;;  %v201_v24 = vadd.s32 %v691_v49, %v696_v52 }
  0x3c   :  { %v104_v55 = vshll.u32 %v103_v53, 30  ;;  %v204_v43 = vsel %vm202_vm14, %v203_v56, %v692_v50  ;;  %v127_v16 = vsub.s32 4, %v103_v53  ;;  %vm133_vm14 = vweird.f32 %v643_v9 }
  0x3d   :  { %v205_v58 = vadd.s32 %v204_v43, %v200_v54 }
  0x3e   :  { %v105_v57 = vsub.s32 %v101_v39, %v104_v55  ;;  %v128_v30 = vsel %vm43_vm4, %v127_v16, %v103_v53 }
  0x3f   :  { %v206_v60 = vadd.s32 536870912, %v205_v58  ;;  %v130_v39 = vsel %vm42_vm5, 0, %v128_v30 }
  0x40   :  { %v107_v59 = vsub.s32 0, %v105_v57  ;;  %v134_v45 = vadd.s32 3, %v130_v39  ;;  %v342_v49 = vand.u32 3, %v130_v39 }
  0x41   :  { %v207_v62 = vshrl.u32 %v206_v60, 30 }
  0x42   :  { %v514_v61 = vmin.u32 %v107_v59, %v105_v57  ;;  %v135_v48 = vand.u32 3, %v134_v45  ;;  %vm347_vm9 = vcmp.eq.s32.totalorder %v342_v49, 2  ;;  %vm344_vm11 = vcmp.eq.s32.totalorder %v342_v49, 0 }
  0x43   :  { %v208_v1 = vshll.u32 %v207_v62, 30  ;;  %v231_v44 = vsub.s32 4, %v207_v62  ;;  %vm343_vm13 = vcmp.lt.s32.totalorder %v342_v49, 2 }
  0x44   :  { %v109_v63 = vclz %v514_v61  ;;  %vm140_vm8 = vcmp.eq.s32.totalorder %v135_v48, 2  ;;  %vm137_vm10 = vcmp.eq.s32.totalorder %v135_v48, 0  ;;  %vm136_vm12 = vcmp.lt.s32.totalorder %v135_v48, 2 }
  0x45   :  { %v209_v3 = vsub.s32 %v205_v58, %v208_v1  ;;  %v232_v47 = vsel %vm147_vm6, %v231_v44, %v207_v62 }
  0x46   :  { %v515_v2 = vadd.s32 4294967294, %v109_v63  ;;  %v234_v52 = vsel %vm146_vm7, 0, %v232_v47 }
  0x47   :  { %v211_v5 = vsub.s32 0, %v209_v3  ;;  %v238_v56 = vadd.s32 3, %v234_v52  ;;  %v445_v60 = vand.u32 3, %v234_v52 }
  0x48   :  { %vm516_vm15 = vcmp.lt.s32.totalorder %v515_v2, 0 }
  0x49   :  { %v112_v31 = vsel %vm516_vm15, 0, %v515_v2  ;;  %v518_v12 = vmin.u32 %v211_v5, %v209_v3  ;;  %v239_v63 = vand.u32 3, %v238_v56  ;;  %vm472_vm15 = vcmask 1043456  }
  0x4a   :  { %v113_v6 = vsub.s32 32, %v112_v31  ;;  %v114_v7 = vshll.u32 %v105_v57, %v112_v31  ;;  %v117_v8 = vsub.s32 4294967266, %v112_v31 }
  0x4b   :  { %v213_v18 = vclz %v518_v12 }
  0x4c   :  { %v115_v14 = vshrl.u32 %v97_v4, %v113_v6  ;;  %v118_v15 = vadd.s32 127, %v117_v8 }
  0x4d   :  { %v519_v21 = vadd.s32 4294967294, %v213_v18 }
  0x4e   :  { %v116_v19 = vor.u32 %v115_v14, %v114_v7  ;;  %v119_v20 = vshll.u32 %v118_v15, 23 }
  0x4f   :  { %vm520_vm3 = vcmp.lt.s32.totalorder %v519_v21, 0 }
  0x50   :  { %v120_v22 = vor.u32 4788187, %v119_v20  ;;  %v123_v23 = vcvt.s32.f32 %v116_v19  ;;  %v216_v17 = vsel %vm520_vm3, 0, %v519_v21  ;;  %vm485_vm3 = vcmask 1046528  }
  0x51   :  { %v217_v27 = vsub.s32 32, %v216_v17  ;;  %v218_v26 = vshll.u32 %v209_v3, %v216_v17  ;;  %v221_v28 = vsub.s32 4294967266, %v216_v17 }
  0x52   :  { %v121_v25 = vand.u32 2147483647, %v120_v22 }
  0x53   :  { %v219_v33 = vshrl.u32 %v201_v24, %v217_v27  ;;  %v222_v34 = vadd.s32 127, %v221_v28 }
  0x54   :  { %v124_v32 = vmul.f32 %v123_v23, %v121_v25 }
  0x55   :  { %v220_v36 = vor.u32 %v219_v33, %v218_v26  ;;  %v223_v29 = vshll.u32 %v222_v34, 23 }
  0x56   :  { %v125_v35 = vxor.u32 2147483648, %v124_v32 }
  0x57   :  { %v224_v40 = vor.u32 4788187, %v223_v29  ;;  %v227_v41 = vcvt.s32.f32 %v220_v36 }
  0x58   :  { %v126_v37 = vsel %vm43_vm4, %v125_v35, %v124_v32  ;;  %vm447_vm4 = vcmp.eq.s32.totalorder %v445_v60, 0 }
  0x59   :  { %v129_v38 = vsel %vm42_vm5, %v643_v9, %v126_v37  ;;  %v225_v42 = vand.u32 2147483647, %v224_v40  ;;  %vm450_vm5 = vcmp.eq.s32.totalorder %v445_v60, 2 }
  0x5a   :  { %547 = vcosq.f32 %v129_v38 }
  0x5b   :  { %549 = vsinq.f32 %v129_v38  ;;  %v228_v46 = vmul.f32 %v227_v41, %v225_v42 }
  0x5d   :  { %v229_v11 = vxor.u32 2147483648, %v228_v46 }
  0x5f   :  { %v230_v50 = vsel %vm147_vm6, %v229_v11, %v228_v46  ;;  %vm244_vm6 = vcmp.eq.s32.totalorder %v239_v63, 2 }
  0x60   :  { %v233_v51 = vsel %vm146_vm7, %v646_v10, %v230_v50  ;;  %vm241_vm7 = vcmp.eq.s32.totalorder %v239_v63, 0 }
  0x61   :  { %551 = vcosq.f32 %v233_v51 }
  0x62   :  { %553 = vsinq.f32 %v233_v51 }
  0x64   :  { %v548_v53 = vpop.eup %547 }
  0x65   :  { %v550_v54 = vpop.eup %549  ;;  %v141_v55 = vxor.u32 2147483648, %v548_v53 }
  0x66   :  { %v138_v13 = vxor.u32 2147483648, %v550_v54 }
  0x67   :  { %v142_v57 = vsel %vm140_vm8, %v141_v55, %v550_v54  ;;  %v349_v43 = vsel %vm347_vm9, %v141_v55, %v550_v54  ;;  %vm240_vm8 = vcmp.lt.s32.totalorder %v239_v63, 2  ;;  %vm446_vm9 = vcmp.lt.s32.totalorder %v445_v60, 2 }
  0x68   :  { %v139_v58 = vsel %vm137_vm10, %v548_v53, %v138_v13  ;;  %v346_v59 = vsel %vm344_vm11, %v548_v53, %v138_v13  ;;  %vm237_vm10 = vweird.f32 %v646_v10  ;;  %vm489_vm11 = vcmask 1044480  }
  0x69   :  { %v143_v61 = vsel %vm136_vm12, %v139_v58, %v142_v57  ;;  %v350_v62 = vsel %vm343_vm13, %v346_v59, %v349_v43 }
  0x6a   :  { %v144_v1 = vsel %vm133_vm14, nan, %v143_v61  ;;  %v351_v2 = vsel %vm133_vm14, nan, %v350_v62 }
  0x6b   :  { %v456_v3 = vrot.slane %v144_v1, 5  ;;  %v459_v4 = vrot.slane %v351_v2, 2  ;;  %v461_v31 = vrot.slane %v144_v1, 2  ;;  %v463_v5 = vrot.slane %v351_v2, 7  ;;  %v552_v6 = vpop.eup %551 }
  0x6c   :  { %v466_v7 = vrot.slane %v144_v1, 7  ;;  %v554_v12 = vpop.eup %553  ;;  %v245_v18 = vxor.u32 2147483648, %v552_v6  ;;  %v473_v16 = vrot.slane %v351_v2, 4 }
  0x6d   :  { %v481_v9 = vsel %vm35_vm0, %v635_v0, %v456_v3  ;;  %v483_v8 = vsel %vm39_vm2, %v459_v4, %v461_v31  ;;  %v242_v20 = vxor.u32 2147483648, %v554_v12 }
  0x6e   :  { %v482_v14 = vsel %vm37_vm1, %v481_v9, %v459_v4  ;;  %v484_v15 = vsel %vm472_vm15, %v483_v8, %v463_v5  ;;  %v246_v0 = vsel %vm244_vm6, %v245_v18, %v554_v12  ;;  %v452_v21 = vsel %vm450_vm5, %v245_v18, %v554_v12 }
  0x6f   :  { %492 = vst [vmem:[#allocation5] sm:$0xff] %v482_v14  ;;  %v486_v19 = vsel %vm485_vm3, %v484_v15, %v466_v7  ;;  %v243_v22 = vsel %vm241_vm7, %v552_v6, %v242_v20  ;;  %v449_v23 = vsel %vm447_vm4, %v552_v6, %v242_v20  ;;  %vm487_vm1 = vcmask 1041408  }
  0x70   :  { %493 = vst [vmem:[#allocation5 + $0x8] sm:$0xff] %v486_v19  ;;  %v247_v24 = vsel %vm240_vm8, %v243_v22, %v246_v0  ;;  %v453_v25 = vsel %vm446_vm9, %v449_v23, %v452_v21 }
  0x71   :  { %v248_v17 = vsel %vm237_vm10, nan, %v247_v24  ;;  %v454_v27 = vsel %vm237_vm10, nan, %v453_v25 }
  0x72   :  { %v467_v26 = vrot.slane %v248_v17, 7  ;;  %v474_v28 = vrot.slane %v454_v27, 4  ;;  %v477_v32 = vrot.slane %v248_v17, 4  ;;  %v479_v33 = vrot.slane %v454_v27, 1 }
  0x74   :  { %v468_v10 = vsel %vm39_vm2, %v466_v7, %v467_v26  ;;  %v475_v34 = vsel %vm472_vm15, %v473_v16, %v474_v28  ;;  %v491_v35 = vsel %vm35_vm0, %v479_v33, 0.0 }
  0x75   :  { %v488_v30 = vsel %vm487_vm1, %v468_v10, %v475_v34  ;;  %495 = vst [vmem:[#allocation5 + $0x18] sm:$0x7] %v491_v35 }
  0x76   :  { %v490_v36 = vsel %vm489_vm11, %v488_v30, %v477_v32 }
  0x77   :  { %494 = vst [vmem:[#allocation5 + $0x10] sm:$0xff] %v490_v36 }
  0x78   :  { %588 = shalt.err (!%p585_p12)
}
  0x79   :  { %s589_s22 = scalar_lea.hbm %s737_s1, 512 }
  0x7a   :  { %p590_p13 = scmp.ne.s32.totalorder %s737_s1, %s589_s22  ;;  %p593_p0 = scmp.lt.u32.totalorder %s589_s22, %s737_s1 }
  0x7c   :  { %p595_p1 = pnand %p593_p0, %p590_p13 }
  0x7e   :  { %598 = shalt.err (!%p595_p1)
}
  0x7f   :  { %s611_s27 = smov 128   ;;  %s612_s28 = smov 8  }
  0x80   :  { %507 = dma.vmem_to_hbm [thread:$0]  %s502_s18, 512, %s737_s1, [#allocation4], %s611_s27, %s611_s27, %s612_s28  }
  0x81   :  { %601 = dma.done.wait [#allocation4], 512  }
  0x82   :  { %602 = vsyncadd [#allocation4], 4294966784 }
  0x83   :  { %511 = vsyncpa [#allocation3], 1 }
  0x84   :  { %512 = vsyncpa [#allocation4], 1 }

</bundles_post_ra>
